<compile_context>
chip_gen: v7x
topology: tpu7x:2x2x1
jax: 0.10.0
libtpu: 0.0.40
codegen_flags: <defaults>
</compile_context>

<pallas_src>
import jax
import jax.numpy as jnp
from jax.experimental import pallas as pl
from jax.experimental.pallas import tpu as pltpu

_SUBLANE = 8
_D_IN = 28 * 28
_HIDDEN = 64
_N_CLASSES = 10


def _round_up(n, m):
    return ((n + m - 1) // m) * m


def _cdiv(a, b):
    return (a + b - 1) // b


def _mlp_kernel(x_ref, w1_ref, b1_ref, w2_ref, b2_ref,
                w3_ref, b3_ref, w4_ref, b4_ref, o_ref):
    bf16 = jnp.bfloat16
    # Cast the streamed activation tile to bf16 in-register (single MXU pass,
    # f32 accumulation). Works whether x arrives as f32 or bf16.
    x = x_ref[...].astype(bf16)

    h = jnp.dot(x, w1_ref[...], preferred_element_type=jnp.float32) + b1_ref[...]
    h = jnp.maximum(h, 0.0).astype(bf16)

    h = jnp.dot(h, w2_ref[...], preferred_element_type=jnp.float32) + b2_ref[...]
    h = jnp.maximum(h, 0.0).astype(bf16)

    h = jnp.dot(h, w3_ref[...], preferred_element_type=jnp.float32) + b3_ref[...]
    h = jnp.maximum(h, 0.0).astype(bf16)

    logits = jnp.dot(h, w4_ref[...], preferred_element_type=jnp.float32) + b4_ref[...]

    # Row-wise log_softmax over the 10 real classes (no padded columns).
    m = jnp.max(logits, axis=-1, keepdims=True)
    shifted = logits - m
    lse = jnp.log(jnp.sum(jnp.exp(shifted), axis=-1, keepdims=True))
    o_ref[...] = (shifted - lse).astype(o_ref.dtype)


def mlp_forward(x, params, *, batch_tile=1024):
    """x: (B, 784) float32 (or bfloat16).
    params: dict w1..w4 stored (in, out), b1..b4 stored (1, out). -> (B, 10) f32."""
    B, d_in = x.shape
    assert d_in == _D_IN

    # One-time tiny cast of the resident weights to bf16; biases stay f32.
    w1 = params["w1"].astype(jnp.bfloat16)
    w2 = params["w2"].astype(jnp.bfloat16)
    w3 = params["w3"].astype(jnp.bfloat16)
    w4 = params["w4"].astype(jnp.bfloat16)
    b1 = params["b1"].astype(jnp.float32)
    b2 = params["b2"].astype(jnp.float32)
    b3 = params["b3"].astype(jnp.float32)
    b4 = params["b4"].astype(jnp.float32)

    # ---- batch tiling: no whole-array padding copy of x ----
    #  * tiny batches  -> one full-dim block (legal for any B)
    #  * otherwise     -> bt is a multiple of 8; ragged last block handled by
    #                     Pallas (OOB writes discarded; ops are row-wise)
    #  * >= 2 grid steps whenever the batch allows it (v7x has 2 TCs)
    min_steps = 2 if B >= 2 * _SUBLANE else 1
    n_steps = max(min_steps, _cdiv(B, batch_tile))
    bt = min(_round_up(_cdiv(B, n_steps), _SUBLANE), B)
    grid = (_cdiv(B, bt),)

    def resident(arr):
        # Grid-invariant block: Pallas skips the re-fetch across grid steps,
        # so these stay VMEM-resident.
        return pl.BlockSpec(arr.shape, lambda i: (0, 0))

    flops = 2 * B * (_D_IN * _HIDDEN + 2 * _HIDDEN * _HIDDEN + _HIDDEN * _N_CLASSES)
    param_bytes = sum(int(a.size) * a.dtype.itemsize
                      for a in (w1, w2, w3, w4, b1, b2, b3, b4))
    bytes_accessed = B * (_D_IN * x.dtype.itemsize + _N_CLASSES * 4) + param_bytes
    cost = pl.CostEstimate(flops=flops,
                           transcendentals=B * (_N_CLASSES + 1),
                           bytes_accessed=bytes_accessed)

    out = pl.pallas_call(
        _mlp_kernel,
        out_shape=jax.ShapeDtypeStruct((B, _N_CLASSES), jnp.float32),
        grid_spec=pltpu.PrefetchScalarGridSpec(
            num_scalar_prefetch=0,
            grid=grid,
            in_specs=[
                pl.BlockSpec((bt, _D_IN), lambda i: (i, 0)),
                resident(w1), resident(b1),
                resident(w2), resident(b2),
                resident(w3), resident(b3),
                resident(w4), resident(b4),
            ],
            out_specs=pl.BlockSpec((bt, _N_CLASSES), lambda i: (i, 0)),
        ),
        compiler_params=pltpu.CompilerParams(
            dimension_semantics=("parallel",),
        ),
        cost_estimate=cost,
    )(x, w1, b1, w2, b2, w3, b3, w4, b4)

    return out


def init_params(key):
    """Deterministic init mirroring nn.Linear shapes (weights stored (in, out))."""
    dims = [(_D_IN, _HIDDEN), (_HIDDEN, _HIDDEN), (_HIDDEN, _HIDDEN), (_HIDDEN, _N_CLASSES)]
    params = {}
    for idx, (d_in, d_out) in enumerate(dims, start=1):
        key, kw, kb = jax.random.split(key, 3)
        bound = 1.0 / jnp.sqrt(d_in)  # PyTorch default uniform bound
        params[f"w{idx}"] = jax.random.uniform(
            kw, (d_in, d_out), jnp.float32, minval=-bound, maxval=bound)
        params[f"b{idx}"] = jax.random.uniform(
            kb, (1, d_out), jnp.float32, minval=-bound, maxval=bound)
    return params


def _reference_f32(x, p):
    h = jnp.maximum(x @ p["w1"] + p["b1"], 0.0)
    h = jnp.maximum(h @ p["w2"] + p["b2"], 0.0)
    h = jnp.maximum(h @ p["w3"] + p["b3"], 0.0)
    return jax.nn.log_softmax(h @ p["w4"] + p["b4"], axis=1)


def _reference_bf16(x, p):
    bf = jnp.bfloat16

    def lin(h, wk, bk):
        return jnp.dot(h.astype(bf), p[wk].astype(bf),
                       preferred_element_type=jnp.float32) + p[bk]

    h = jnp.maximum(lin(x, "w1", "b1"), 0.0)
    h = jnp.maximum(lin(h, "w2", "b2"), 0.0)
    h = jnp.maximum(lin(h, "w3", "b3"), 0.0)
    return jax.nn.log_softmax(lin(h, "w4", "b4"), axis=1)


if __name__ == "__main__":
    key = jax.random.PRNGKey(0)
    key, kx = jax.random.split(key)
    params = init_params(key)

    forward = jax.jit(mlp_forward)

    # Case 1: small batch (not a multiple of 8) -> single full-dim block.
    x10 = jax.random.normal(kx, (10, _D_IN), jnp.float32)
    out10 = jax.block_until_ready(forward(x10, params))
    assert out10.shape == (10, _N_CLASSES)
    assert bool(jnp.allclose(out10, _reference_bf16(x10, params), atol=1e-3, rtol=1e-3))
    assert bool(jnp.allclose(out10, _reference_f32(x10, params), atol=3e-2, rtol=0.0))
    assert bool(jnp.allclose(jnp.sum(jnp.exp(out10), axis=1), 1.0, atol=1e-4))

    # Case 2: 2-step grid with a ragged last block (masked writeback path).
    key, kx2 = jax.random.split(key)
    x20 = jax.random.normal(kx2, (20, _D_IN), jnp.float32)
    out20 = jax.block_until_ready(forward(x20, params))
    assert out20.shape == (20, _N_CLASSES)
    assert bool(jnp.allclose(out20, _reference_bf16(x20, params), atol=1e-3, rtol=1e-3))
    assert bool(jnp.allclose(out20, _reference_f32(x20, params), atol=3e-2, rtol=0.0))

    print("KERNEL_OK")
</pallas_src>

<mosaic_0001>
module attributes {stable_mosaic.version = 11 : i64} {
  func.func @_mlp_kernel(%arg0: i32, %arg1: memref<10x784xf32, #tpu.memory_space<vmem>>, %arg2: memref<784x64xbf16, #tpu.memory_space<vmem>>, %arg3: memref<1x64xf32, #tpu.memory_space<vmem>>, %arg4: memref<64x64xbf16, #tpu.memory_space<vmem>>, %arg5: memref<1x64xf32, #tpu.memory_space<vmem>>, %arg6: memref<64x64xbf16, #tpu.memory_space<vmem>>, %arg7: memref<1x64xf32, #tpu.memory_space<vmem>>, %arg8: memref<64x10xbf16, #tpu.memory_space<vmem>>, %arg9: memref<1x10xf32, #tpu.memory_space<vmem>>, %arg10: memref<10x10xf32, #tpu.memory_space<vmem>>) attributes {dimension_semantics = [#tpu.dimension_semantics<parallel>], iteration_bounds = array<i64: 1>, scalar_prefetch = 0 : i64, scratch_operands = 0 : i64, tpu.core_type = #tpu.core_type<tc>, window_params = [{transform_indices = @transform_0, window_bounds = array<i64: 10, 784>}, {pipeline_mode = #tpu.pipeline_mode<synchronous>, transform_indices = @transform_1, window_bounds = array<i64: 784, 64>}, {pipeline_mode = #tpu.pipeline_mode<synchronous>, transform_indices = @transform_2, window_bounds = array<i64: 1, 64>}, {pipeline_mode = #tpu.pipeline_mode<synchronous>, transform_indices = @transform_3, window_bounds = array<i64: 64, 64>}, {pipeline_mode = #tpu.pipeline_mode<synchronous>, transform_indices = @transform_4, window_bounds = array<i64: 1, 64>}, {pipeline_mode = #tpu.pipeline_mode<synchronous>, transform_indices = @transform_5, window_bounds = array<i64: 64, 64>}, {pipeline_mode = #tpu.pipeline_mode<synchronous>, transform_indices = @transform_6, window_bounds = array<i64: 1, 64>}, {pipeline_mode = #tpu.pipeline_mode<synchronous>, transform_indices = @transform_7, window_bounds = array<i64: 64, 10>}, {pipeline_mode = #tpu.pipeline_mode<synchronous>, transform_indices = @transform_8, window_bounds = array<i64: 1, 10>}, {transform_indices = @transform_9, window_bounds = array<i64: 10, 10>}]} {
    %c0 = arith.constant 0 : index
    %c0_0 = arith.constant 0 : index
    %0 = vector.load %arg1[%c0, %c0_0] : memref<10x784xf32, #tpu.memory_space<vmem>>, vector<10x784xf32>
    %1 = arith.truncf %0 : vector<10x784xf32> to vector<10x784xbf16>
    %c0_1 = arith.constant 0 : index
    %c0_2 = arith.constant 0 : index
    %2 = vector.load %arg2[%c0_1, %c0_2] : memref<784x64xbf16, #tpu.memory_space<vmem>>, vector<784x64xbf16>
    %cst = arith.constant dense<0.000000e+00> : vector<10x64xf32>
    %3 = tpu.matmul %1, %2, %cst {dimension_numbers = #tpu.dot_dimension_numbers<[1], [0], [0], [1], [0, 0, 1, 1], [], []>} : vector<10x784xbf16>, vector<784x64xbf16>, vector<10x64xf32> -> vector<10x64xf32>
    %c0_3 = arith.constant 0 : index
    %c0_4 = arith.constant 0 : index
    %4 = vector.load %arg3[%c0_3, %c0_4] : memref<1x64xf32, #tpu.memory_space<vmem>>, vector<1x64xf32>
    %5 = vector.broadcast %4 : vector<1x64xf32> to vector<10x64xf32>
    %6 = arith.addf %3, %5 : vector<10x64xf32>
    %cst_5 = arith.constant 0.000000e+00 : f32
    %7 = vector.broadcast %cst_5 : f32 to vector<10x64xf32>
    %8 = arith.maximumf %6, %7 : vector<10x64xf32>
    %9 = arith.truncf %8 : vector<10x64xf32> to vector<10x64xbf16>
    %c0_6 = arith.constant 0 : index
    %c0_7 = arith.constant 0 : index
    %10 = vector.load %arg4[%c0_6, %c0_7] : memref<64x64xbf16, #tpu.memory_space<vmem>>, vector<64x64xbf16>
    %cst_8 = arith.constant dense<0.000000e+00> : vector<10x64xf32>
    %11 = tpu.matmul %9, %10, %cst_8 {dimension_numbers = #tpu.dot_dimension_numbers<[1], [0], [0], [1], [0, 0, 1, 1], [], []>} : vector<10x64xbf16>, vector<64x64xbf16>, vector<10x64xf32> -> vector<10x64xf32>
    %c0_9 = arith.constant 0 : index
    %c0_10 = arith.constant 0 : index
    %12 = vector.load %arg5[%c0_9, %c0_10] : memref<1x64xf32, #tpu.memory_space<vmem>>, vector<1x64xf32>
    %13 = vector.broadcast %12 : vector<1x64xf32> to vector<10x64xf32>
    %14 = arith.addf %11, %13 : vector<10x64xf32>
    %cst_11 = arith.constant 0.000000e+00 : f32
    %15 = vector.broadcast %cst_11 : f32 to vector<10x64xf32>
    %16 = arith.maximumf %14, %15 : vector<10x64xf32>
    %17 = arith.truncf %16 : vector<10x64xf32> to vector<10x64xbf16>
    %c0_12 = arith.constant 0 : index
    %c0_13 = arith.constant 0 : index
    %18 = vector.load %arg6[%c0_12, %c0_13] : memref<64x64xbf16, #tpu.memory_space<vmem>>, vector<64x64xbf16>
    %cst_14 = arith.constant dense<0.000000e+00> : vector<10x64xf32>
    %19 = tpu.matmul %17, %18, %cst_14 {dimension_numbers = #tpu.dot_dimension_numbers<[1], [0], [0], [1], [0, 0, 1, 1], [], []>} : vector<10x64xbf16>, vector<64x64xbf16>, vector<10x64xf32> -> vector<10x64xf32>
    %c0_15 = arith.constant 0 : index
    %c0_16 = arith.constant 0 : index
    %20 = vector.load %arg7[%c0_15, %c0_16] : memref<1x64xf32, #tpu.memory_space<vmem>>, vector<1x64xf32>
    %21 = vector.broadcast %20 : vector<1x64xf32> to vector<10x64xf32>
    %22 = arith.addf %19, %21 : vector<10x64xf32>
    %cst_17 = arith.constant 0.000000e+00 : f32
    %23 = vector.broadcast %cst_17 : f32 to vector<10x64xf32>
    %24 = arith.maximumf %22, %23 : vector<10x64xf32>
    %25 = arith.truncf %24 : vector<10x64xf32> to vector<10x64xbf16>
    %c0_18 = arith.constant 0 : index
    %c0_19 = arith.constant 0 : index
    %26 = vector.load %arg8[%c0_18, %c0_19] : memref<64x10xbf16, #tpu.memory_space<vmem>>, vector<64x10xbf16>
    %cst_20 = arith.constant dense<0.000000e+00> : vector<10x10xf32>
    %27 = tpu.matmul %25, %26, %cst_20 {dimension_numbers = #tpu.dot_dimension_numbers<[1], [0], [0], [1], [0, 0, 1, 1], [], []>} : vector<10x64xbf16>, vector<64x10xbf16>, vector<10x10xf32> -> vector<10x10xf32>
    %c0_21 = arith.constant 0 : index
    %c0_22 = arith.constant 0 : index
    %28 = vector.load %arg9[%c0_21, %c0_22] : memref<1x10xf32, #tpu.memory_space<vmem>>, vector<1x10xf32>
    %29 = vector.broadcast %28 : vector<1x10xf32> to vector<10x10xf32>
    %30 = arith.addf %27, %29 : vector<10x10xf32>
    %cst_23 = arith.constant dense<0xFF800000> : vector<10xf32>
    %31 = vector.multi_reduction <maximumf>, %30, %cst_23 [1] : vector<10x10xf32> to vector<10xf32>
    %32 = vector.shape_cast %31 : vector<10xf32> to vector<10x1xf32>
    %33 = vector.broadcast %32 : vector<10x1xf32> to vector<10x10xf32>
    %34 = arith.subf %30, %33 : vector<10x10xf32>
    %35 = math.exp %34 : vector<10x10xf32>
    %cst_24 = arith.constant dense<0.000000e+00> : vector<10xf32>
    %36 = vector.multi_reduction <add>, %35, %cst_24 [1] : vector<10x10xf32> to vector<10xf32>
    %37 = vector.shape_cast %36 : vector<10xf32> to vector<10x1xf32>
    %38 = math.log %37 : vector<10x1xf32>
    %39 = vector.broadcast %38 : vector<10x1xf32> to vector<10x10xf32>
    %40 = arith.subf %34, %39 : vector<10x10xf32>
    %c0_25 = arith.constant 0 : index
    %c0_26 = arith.constant 0 : index
    %41 = vector.load %arg10[%c0_25, %c0_26] : memref<10x10xf32, #tpu.memory_space<vmem>>, vector<10x10xf32>
    tpu.vector_store %arg10[%c0_25, %c0_26], %40 {strides = array<i32>} : memref<10x10xf32, #tpu.memory_space<vmem>>, vector<10x10xf32>,
    return
  }
  func.func @transform_0(%arg0: i32) -> (i32, i32) {
    %c0_i32 = arith.constant 0 : i32
    %c0_i32_0 = arith.constant 0 : i32
    return %arg0, %c0_i32 : i32, i32
  }
  func.func @transform_1(%arg0: i32) -> (i32, i32) {
    %c0_i32 = arith.constant 0 : i32
    %c0_i32_0 = arith.constant 0 : i32
    %c0_i32_1 = arith.constant 0 : i32
    return %c0_i32, %c0_i32_0 : i32, i32
  }
  func.func @transform_2(%arg0: i32) -> (i32, i32) {
    %c0_i32 = arith.constant 0 : i32
    %c0_i32_0 = arith.constant 0 : i32
    %c0_i32_1 = arith.constant 0 : i32
    return %c0_i32, %c0_i32_0 : i32, i32
  }
  func.func @transform_3(%arg0: i32) -> (i32, i32) {
    %c0_i32 = arith.constant 0 : i32
    %c0_i32_0 = arith.constant 0 : i32
    %c0_i32_1 = arith.constant 0 : i32
    return %c0_i32, %c0_i32_0 : i32, i32
  }
  func.func @transform_4(%arg0: i32) -> (i32, i32) {
    %c0_i32 = arith.constant 0 : i32
    %c0_i32_0 = arith.constant 0 : i32
    %c0_i32_1 = arith.constant 0 : i32
    return %c0_i32, %c0_i32_0 : i32, i32
  }
  func.func @transform_5(%arg0: i32) -> (i32, i32) {
    %c0_i32 = arith.constant 0 : i32
    %c0_i32_0 = arith.constant 0 : i32
    %c0_i32_1 = arith.constant 0 : i32
    return %c0_i32, %c0_i32_0 : i32, i32
  }
  func.func @transform_6(%arg0: i32) -> (i32, i32) {
    %c0_i32 = arith.constant 0 : i32
    %c0_i32_0 = arith.constant 0 : i32
    %c0_i32_1 = arith.constant 0 : i32
    return %c0_i32, %c0_i32_0 : i32, i32
  }
  func.func @transform_7(%arg0: i32) -> (i32, i32) {
    %c0_i32 = arith.constant 0 : i32
    %c0_i32_0 = arith.constant 0 : i32
    %c0_i32_1 = arith.constant 0 : i32
    return %c0_i32, %c0_i32_0 : i32, i32
  }
  func.func @transform_8(%arg0: i32) -> (i32, i32) {
    %c0_i32 = arith.constant 0 : i32
    %c0_i32_0 = arith.constant 0 : i32
    %c0_i32_1 = arith.constant 0 : i32
    return %c0_i32, %c0_i32_0 : i32, i32
  }
  func.func @transform_9(%arg0: i32) -> (i32, i32) {
    %c0_i32 = arith.constant 0 : i32
    %c0_i32_0 = arith.constant 0 : i32
    return %arg0, %c0_i32 : i32, i32
  }
}

</mosaic_0001>

<bundles_post_ra>
// kernel: mlp_forward.1
= control target key start
LH: loop header
LB: loop body
LE: loop exit
PB: predicated region body
PF: predicated region fallthrough
CT: control target
= control target key end

     0   :  { %v1217_v43 = vmov 0.0   ;;  %vm1218_vm0 = vmmov 0   ;;  %vm454_vm1 = vcmask 130048   ;;  %s1551_s0 = inlined_call_operand.vmem [shape: f32[10,784], index: 0, kind: input, shape index: {}]   ;;  %s1552_s1 = inlined_call_operand.vmem [shape: bf16[784,64], index: 1, kind: input, shape index: {}]   ;;  %s1553_s2 = inlined_call_operand.vmem [shape: f32[1,64], index: 2, kind: input, shape index: {}]   ;;  %s1554_s3 = inlined_call_operand.vmem [shape: bf16[64,64], index: 3, kind: input, shape index: {}]   ;;  %s1555_s4 = inlined_call_operand.vmem [shape: f32[1,64], index: 4, kind: input, shape index: {}]   ;;  %s1556_s5 = inlined_call_operand.vmem [shape: bf16[64,64], index: 5, kind: input, shape index: {}]   ;;  %s1557_s6 = inlined_call_operand.vmem [shape: f32[1,64], index: 6, kind: input, shape index: {}]   ;;  %s1558_s7 = inlined_call_operand.vmem [shape: bf16[64,10], index: 7, kind: input, shape index: {}]   ;;  %s1559_s8 = inlined_call_operand.vmem [shape: f32[1,10], index: 8, kind: input, shape index: {}]   ;;  %s1560_s9 = inlined_call_operand.hbm [shape: f32[10,10], index: 9, kind: output, shape index: {}]  }
   0x1   :  { %v1124_v0 = vld [vmem:[%s1552_s1 + $0x40] sm:$0xff]   ;;  %v1128_v4 = vld [vmem:[%s1552_s1 + $0x48] sm:$0xff]   ;;  %v1132_v8 = vld [vmem:[%s1552_s1 + $0x50] sm:$0xff]  }
   0x2   :  { %v1125_v1 = vld [vmem:[%s1552_s1] sm:$0xff]   ;;  %994 = vmatprep.subr.bf16.mxu0 %v1124_v0  ;;  %v1129_v5 = vld [vmem:[%s1552_s1 + $0x8] sm:$0xff]   ;;  %v1133_v9 = vld [vmem:[%s1552_s1 + $0x10] sm:$0xff]  }
   0x3   :  { %v1126_v2 = vld [vmem:[%s1552_s1 + $0xc0] sm:$0xff]   ;;  %995 = vmatpush3.bf16.msra.mxu0 %v1125_v1  ;;  %v1130_v6 = vld [vmem:[%s1552_s1 + $0xc8] sm:$0xff]   ;;  %v1134_v10 = vld [vmem:[%s1552_s1 + $0xd0] sm:$0xff]  }
   0x4   :  { %v1127_v3 = vld [vmem:[%s1552_s1 + $0x80] sm:$0xff]   ;;  %1016 = vmatprep.subr.bf16.mxu1 %v1126_v2  ;;  %996 = vmatprep.subr.bf16.mxu0 %v1128_v4  ;;  %v1131_v7 = vld [vmem:[%s1552_s1 + $0x88] sm:$0xff]   ;;  %v1135_v11 = vld [vmem:[%s1552_s1 + $0x90] sm:$0xff]  }
   0x5   :  { %1017 = vmatpush3.bf16.msra.mxu1 %v1127_v3  ;;  %v1136_v12 = vld [vmem:[%s1552_s1 + $0x58] sm:$0xff]   ;;  %v1140_v16 = vld [vmem:[%s1552_s1 + $0x60] sm:$0xff]   ;;  %v1144_v20 = vld [vmem:[%s1552_s1 + $0x68] sm:$0xff]  }
   0x6   :  { %1018 = vmatprep.subr.bf16.mxu1 %v1130_v6  ;;  %v1137_v13 = vld [vmem:[%s1552_s1 + $0x18] sm:$0xff]   ;;  %v1141_v17 = vld [vmem:[%s1552_s1 + $0x20] sm:$0xff]   ;;  %v1145_v21 = vld [vmem:[%s1552_s1 + $0x28] sm:$0xff]  }
   0x7   :  { %997 = vmatpush3.bf16.msra.mxu0 %v1129_v5  ;;  %v1138_v14 = vld [vmem:[%s1552_s1 + $0xd8] sm:$0xff]   ;;  %v1142_v18 = vld [vmem:[%s1552_s1 + $0xe0] sm:$0xff]   ;;  %v1146_v22 = vld [vmem:[%s1552_s1 + $0xe8] sm:$0xff]  }
   0x8   :  { %998 = vmatprep.subr.bf16.mxu0 %v1132_v8  ;;  %v1139_v15 = vld [vmem:[%s1552_s1 + $0x98] sm:$0xff]   ;;  %v1143_v19 = vld [vmem:[%s1552_s1 + $0xa0] sm:$0xff]   ;;  %v1147_v23 = vld [vmem:[%s1552_s1 + $0xa8] sm:$0xff]  }
   0x9   :  { %1019 = vmatpush3.bf16.msra.mxu1 %v1131_v7  ;;  %v1148_v24 = vld [vmem:[%s1552_s1 + $0x70] sm:$0xff]   ;;  %v1152_v28 = vld [vmem:[%s1552_s1 + $0x78] sm:$0xff]   ;;  %v35_v31 = vld [vmem:[%s1551_s0 + $0x8] sm:$0xff] }
   0xa   :  { %1020 = vmatprep.subr.bf16.mxu1 %v1134_v10  ;;  %v1149_v25 = vld [vmem:[%s1552_s1 + $0x30] sm:$0xff]   ;;  %v1153_v29 = vld [vmem:[%s1552_s1 + $0x38] sm:$0xff]   ;;  %v42_v32 = vld [vmem:[%s1551_s0 + $0x40] sm:$0x3] }
   0xb   :  { %999 = vmatpush3.bf16.msra.mxu0 %v1133_v9  ;;  %v1150_v26 = vld [vmem:[%s1552_s1 + $0xf0] sm:$0xff]   ;;  %v1154_v30 = vld [vmem:[%s1552_s1 + $0xf8] sm:$0xff]   ;;  %v49_v33 = vpack.c.bf16 %v42_v32, %v35_v31  ;;  %v34_v35 = vld [vmem:[%s1551_s0] sm:$0xff] }
   0xc   :  { %1000 = vmatprep.subr.bf16.mxu0 %v1136_v12  ;;  %v1151_v27 = vld [vmem:[%s1552_s1 + $0xb0] sm:$0xff]   ;;  %v1155_v34 = vld [vmem:[%s1552_s1 + $0xb8] sm:$0xff]   ;;  %v1156_v38 = vld [vmem:[%s1552_s1 + $0x140] sm:$0xff]  }
   0xd   :  { %1021 = vmatpush3.bf16.msra.mxu1 %v1135_v11  ;;  %v41_v36 = vld [vmem:[%s1551_s0 + $0x38] sm:$0x3]  ;;  %490 = vmatprep.mubr.bf16.mxu0 %v49_v33  ;;  %v44_v40 = vld [vmem:[%s1551_s0 + $0x50] sm:$0x3]  ;;  %v1157_v42 = vld [vmem:[%s1552_s1 + $0x100] sm:$0xff]  }
   0xe   :  { %1022 = vmatprep.subr.bf16.mxu1 %v1138_v14  ;;  %v48_v37 = vpack.c.bf16 %v41_v36, %v34_v35  ;;  %v37_v39 = vld [vmem:[%s1551_s0 + $0x18] sm:$0xff]  ;;  %v36_v44 = vld [vmem:[%s1551_s0 + $0x10] sm:$0xff]  ;;  %v43_v45 = vld [vmem:[%s1551_s0 + $0x48] sm:$0x3] }
   0xf   :  { %1001 = vmatpush3.bf16.msra.mxu0 %v1137_v13  ;;  %v51_v41 = vpack.c.bf16 %v44_v40, %v37_v39  ;;  %v50_v46 = vpack.c.bf16 %v43_v45, %v36_v44  ;;  %v1158_v47 = vld [vmem:[%s1552_s1 + $0x148] sm:$0xff]   ;;  %v1160_v49 = vld [vmem:[%s1552_s1 + $0x150] sm:$0xff]   ;;  %v1162_v51 = vld [vmem:[%s1552_s1 + $0x158] sm:$0xff]  }
  0x10   :  { %1002 = vmatprep.subr.bf16.mxu0 %v1140_v16  ;;  %v1159_v48 = vld [vmem:[%s1552_s1 + $0x108] sm:$0xff]   ;;  %v1161_v50 = vld [vmem:[%s1552_s1 + $0x110] sm:$0xff]   ;;  %v1163_v52 = vld [vmem:[%s1552_s1 + $0x118] sm:$0xff]  }
  0x11   :  { %1023 = vmatpush3.bf16.msra.mxu1 %v1139_v15  ;;  %531 = vmatprep.mubr.bf16.mxu1 %v51_v41  ;;  %v1164_v53 = vld [vmem:[%s1552_s1 + $0x160] sm:$0xff]   ;;  %v1166_v55 = vld [vmem:[%s1552_s1 + $0x168] sm:$0xff]   ;;  %v1168_v59 = vld [vmem:[%s1552_s1 + $0x170] sm:$0xff]  }
  0x12   :  { %1024 = vmatprep.subr.bf16.mxu1 %v1142_v18  ;;  %v1165_v54 = vld [vmem:[%s1552_s1 + $0x120] sm:$0xff]   ;;  %v39_v57 = vld [vmem:[%s1551_s0 + $0x28] sm:$0xff]  ;;  %v40_v62 = vld [vmem:[%s1551_s0 + $0x30] sm:$0xff] }
  0x13   :  { %1003 = vmatpush3.bf16.msra.mxu0 %v1141_v17  ;;  %v1172_v56 = vld [vmem:[%s1552_s1 + $0x180] sm:$0xff]   ;;  %v1167_v58 = vld [vmem:[%s1552_s1 + $0x128] sm:$0xff]   ;;  %v1169_v1 = vld [vmem:[%s1552_s1 + $0x130] sm:$0xff]  }
  0x14   :  { %1004 = vmatprep.subr.bf16.mxu0 %v1144_v20  ;;  %v46_v60 = vld [vmem:[%s1551_s0 + $0x60] sm:$0x3]  ;;  %v47_v63 = vld [vmem:[%s1551_s0 + $0x68] sm:$0x3]  ;;  %v1170_v2 = vld [vmem:[%s1552_s1 + $0x178] sm:$0xff]  }
  0x15   :  { %1025 = vmatpush3.bf16.msra.mxu1 %v1143_v19  ;;  %v53_v61 = vpack.c.bf16 %v46_v60, %v39_v57  ;;  %v54_v0 = vpack.c.bf16 %v47_v63, %v40_v62  ;;  %v1171_v3 = vld [vmem:[%s1552_s1 + $0x138] sm:$0xff]   ;;  %v38_v4 = vld [vmem:[%s1551_s0 + $0x20] sm:$0xff] }
  0x16   :  { %1026 = vmatprep.subr.bf16.mxu1 %v1146_v22  ;;  %v45_v5 = vld [vmem:[%s1551_s0 + $0x58] sm:$0x3] }
  0x17   :  { %1005 = vmatpush3.bf16.msra.mxu0 %v1145_v21 }
  0x18   :  { %1006 = vmatprep.subr.bf16.mxu0 %v1148_v24 }
  0x19   :  { %1027 = vmatpush3.bf16.msra.mxu1 %v1147_v23 }
  0x1a   :  { %1028 = vmatprep.subr.bf16.mxu1 %v1150_v26 }
  0x1b   :  { %1007 = vmatpush3.bf16.msra.mxu0 %v1149_v25 }
  0x1c   :  { %1008 = vmatprep.subr.bf16.mxu0 %v1152_v28 }
  0x1d   :  { %1029 = vmatpush3.bf16.msra.mxu1 %v1151_v27 }
  0x1e   :  { %1030 = vmatprep.subr.bf16.mxu1 %v1154_v30 }
  0x1f   :  { %1009 = vmatpush3.bf16.msra.mxu0 %v1153_v29 }
  0x20   :  { %1038 = vmatprep.subr.bf16.mxu0 %v1156_v38 }
  0x21   :  { %1031 = vmatpush3.bf16.msra.mxu1 %v1155_v34 }
  0x22   :  { %1077 = vmatprep.subr.bf16.mxu1 %v1217_v43  ;;  %491 = vmatmul.mubr.bf16.vlgmr.msra.gmra.mrb[0].mxu0 %v48_v37 }
  0x23   :  { %1039 = vmatpush3.bf16.msra.mxu0 %v1157_v42  ;;  %572 = vmatprep.mubr.bf16.mxu0 %v53_v61 }
  0x24   :  { %532 = vmatmul.mubr.bf16.vlgmr.msra.gmra.mrb[0].mxu1 %v50_v46  ;;  %1040 = vmatprep.subr.bf16.mxu0 %v1158_v47 }
  0x25   :  { %1079 = vmatprep.mubr.msk.bf16.mxu1 %vm1218_vm0, %v1217_v43  ;;  %1078 = vmatpush3.bf16.msra.mxu1 %v1172_v56 }
  0x26   :  { %1083 = vmatprep.subr.bf16.mxu1 %v1217_v43 }
  0x27   :  { %1041 = vmatpush3.bf16.msra.mxu0 %v1159_v48 }
  0x28   :  { %1042 = vmatprep.subr.bf16.mxu0 %v1160_v49 }
  0x2b   :  { %1043 = vmatpush3.bf16.msra.mxu0 %v1161_v50 }
  0x2c   :  { %1044 = vmatprep.subr.bf16.mxu0 %v1162_v51  ;;  %1080 = vmatmul.mubr.msk.bf16.vlgmr.msra.gmra.mrb[4].mxu1 %vm454_vm1, %v54_v0 }
  0x2d   :  { %1091 = vmatprep.mubr.msk.bf16.mxu1 %vm1218_vm0, %v1217_v43 }
  0x2f   :  { %1045 = vmatpush3.bf16.msra.mxu0 %v1163_v52 }
  0x30   :  { %1046 = vmatprep.subr.bf16.mxu0 %v1164_v53 }
  0x33   :  { %1047 = vmatpush3.bf16.msra.mxu0 %v1165_v54 }
  0x34   :  { %1048 = vmatprep.subr.bf16.mxu0 %v1166_v55 }
  0x37   :  { %1049 = vmatpush3.bf16.msra.mxu0 %v1167_v58 }
  0x38   :  { %1050 = vmatprep.subr.bf16.mxu0 %v1168_v59 }
  0x3b   :  { %1051 = vmatpush3.bf16.msra.mxu0 %v1169_v1 }
  0x3c   :  { %14 = vsyncpa [#allocation3], 0  ;;  %1052 = vmatprep.subr.bf16.mxu0 %v1170_v2  ;;  %v52_v6 = vpack.c.bf16 %v45_v5, %v38_v4  ;;  %v1173_v7 = vld [vmem:[%s1554_s3] sm:$0xff]   ;;  %v1174_v8 = vld [vmem:[%s1554_s3 + $0x8] sm:$0xff]   ;;  %vm664_vm2 = vcmask 523264   ;;  %vm881_vm3 = vcmask 80896  }
  0x3d   :  { %1084 = vmatpush3.bf16.msra.mxu1 %v1173_v7  ;;  %v1175_v9 = vld [vmem:[%s1554_s3 + $0x10] sm:$0xff]   ;;  %v1176_v10 = vld [vmem:[%s1554_s3 + $0x18] sm:$0xff]   ;;  %v925_v12 = vld [vmem:[%s1553_s2] ss:$0 sm:$0xff]  ;;  %vm885_vm4 = vcmask 74752  }
  0x3e   :  { %1085 = vmatprep.subr.bf16.mxu1 %v1217_v43  ;;  %v1177_v45 = vld [vmem:[%s1556_s5] sm:$0xff]   ;;  %v1178_v47 = vld [vmem:[%s1556_s5 + $0x8] sm:$0xff]   ;;  %v1179_v48 = vld [vmem:[%s1556_s5 + $0x10] sm:$0xff]  }
  0x3f   :  { %1053 = vmatpush3.bf16.msra.mxu0 %v1171_v3  ;;  %v1180_v49 = vld [vmem:[%s1556_s5 + $0x18] sm:$0xff]   ;;  %v1181_v50 = vld [vmem:[%s1558_s7] sm:$0xff]   ;;  %v1182_v51 = vld [vmem:[%s1558_s7 + $0x8] sm:$0xff]  }
  0x40   :  { %1107 = vmatprep.subr.bf16.mxu0 %v1217_v43  ;;  %v976_v52 = vld [vmem:[%s1555_s4] ss:$0 sm:$0xff]  ;;  %v1183_v62 = vld [vmem:[%s1558_s7 + $0x10] sm:$0xff]   ;;  %v1184_v63 = vld [vmem:[%s1558_s7 + $0x18] sm:$0xff]  }
  0x41   :  { %1086 = vmatpush3.bf16.msra.mxu1 %v1174_v8  ;;  %v982_v0 = vld [vmem:[%s1557_s6] ss:$0 sm:$0xff]  ;;  %s1219_s6 = smov [#allocation2]  }
  0x42   :  { %573 = vmatmul.mubr.bf16.vlgmr.msra.gmra.mrb[4].mxu0 %v52_v6  ;;  %1087 = vmatprep.subr.bf16.mxu1 %v1217_v43  ;;  %s914_s7 = sshll.u32 %s1219_s6, 4  ;;  %s915_s7 = int_to_ptr.vmem [resolvable:$true] %s914_s7 }
  0x43   :  { %1115 = vmatprep.mubr.msk.bf16.mxu0 %vm1218_vm0, %v1217_v43  ;;  %1108 = vmatpush3.bf16.msra.mxu0 %v1181_v50  ;;  %p1198_p1 = scmp.lt.s32.totalorder %s915_s7, %s915_s7 }
  0x44   :  { %1109 = vmatprep.subr.bf16.mxu0 %v1217_v43 }
  0x45   :  { %1088 = vmatpush3.bf16.msra.mxu1 %v1175_v9 }
  0x46   :  { %1089 = vmatprep.subr.bf16.mxu1 %v1217_v43 }
  0x47   :  { %1110 = vmatpush3.bf16.msra.mxu0 %v1182_v51 }
  0x48   :  { %1111 = vmatprep.subr.bf16.mxu0 %v1217_v43 }
  0x49   :  { %1090 = vmatpush3.bf16.msra.mxu1 %v1176_v10 }
  0x4a   :  { %1095 = vmatprep.subr.bf16.mxu1 %v1217_v43 }
  0x4b   :  { %1112 = vmatpush3.bf16.msra.mxu0 %v1183_v62 }
  0x4c   :  { %1113 = vmatprep.subr.bf16.mxu0 %v1217_v43 }
  0x4f   :  { %1114 = vmatpush3.bf16.msra.mxu0 %v1184_v63 }
  0xf5   :  { %v1010_v11 = vpop.f32.mrb[0].mxu0 }
  0xf6   :  { %v1011_v13 = vpop.f32.mrb[1].mxu0 }
  0xf7   :  { %v1012_v14 = vadd.f32 %v1011_v13, %v1010_v11  ;;  %v1013_v15 = vpop.f32.mrb[2].mxu0  ;;  %v1032_v16 = vpop.f32.mrb[0].mxu1 }
  0xf8   :  { %v1014_v17 = vpop.f32.mrb[3].mxu0  ;;  %v1033_v20 = vpop.f32.mrb[1].mxu1 }
  0xf9   :  { %v493_v18 = vadd.f32 %v1012_v14, %v925_v12  ;;  %v1015_v19 = vadd.f32 %v1014_v17, %v1013_v15  ;;  %v1034_v21 = vadd.f32 %v1033_v20, %v1032_v16  ;;  %v1035_v22 = vpop.f32.mrb[2].mxu1 }
  0xfa   :  { %v1036_v24 = vpop.f32.mrb[3].mxu1 }
  0xfb   :  { %v496_v23 = vadd.f32 %v1015_v19, %v925_v12  ;;  %v534_v25 = vadd.f32 %v1034_v21, %v493_v18  ;;  %v1037_v26 = vadd.f32 %v1036_v24, %v1035_v22 }
  0xfd   :  { %v537_v27 = vadd.f32 %v1037_v26, %v496_v23 }
  0xff   :  { %v615_v28 = vpop.f32.mrb[4].mxu1 }
 0x100   :  { %v1081_v29 = vpop.f32.mrb[5].mxu1 }
 0x101   :  { %v618_v30 = vpop.f32.mrb[6].mxu1 }
 0x102   :  { %v1082_v31 = vpop.f32.mrb[7].mxu1 }
 0x115   :  { %v1054_v32 = vpop.f32.mrb[4].mxu0 }
 0x116   :  { %v1055_v33 = vpop.f32.mrb[5].mxu0 }
 0x117   :  { %v1056_v34 = vadd.f32 %v1055_v33, %v1054_v32  ;;  %v1057_v35 = vpop.f32.mrb[6].mxu0 }
 0x118   :  { %v1058_v36 = vpop.f32.mrb[7].mxu0 }
 0x119   :  { %v575_v37 = vadd.f32 %v1056_v34, %v534_v25  ;;  %v1059_v38 = vadd.f32 %v1058_v36, %v1057_v35 }
 0x11b   :  { %v616_v39 = vadd.f32 %v615_v28, %v575_v37  ;;  %v578_v40 = vadd.f32 %v1059_v38, %v537_v27 }
 0x11d   :  { %v619_v41 = vadd.f32 %v618_v30, %v578_v40  ;;  %v622_v42 = vmax.f32 %v616_v39, 0.0 }
 0x11f   :  { %v623_v44 = vmax.f32 %v619_v41, 0.0 }
 0x121   :  { %v624_v46 = vpack.c.bf16 %v623_v44, %v622_v42 }
 0x123   :  { %1092 = vmatmul.mubr.msk.bf16.vlgmr.msra.gmra.mrb[8].mxu1 %vm664_vm2, %v624_v46 }
 0x124   :  { %1096 = vmatpush3.bf16.msra.mxu1 %v1177_v45  ;;  %1103 = vmatprep.mubr.msk.bf16.mxu1 %vm1218_vm0, %v1217_v43 }
 0x125   :  { %1097 = vmatprep.subr.bf16.mxu1 %v1217_v43 }
 0x128   :  { %1098 = vmatpush3.bf16.msra.mxu1 %v1178_v47 }
 0x129   :  { %1099 = vmatprep.subr.bf16.mxu1 %v1217_v43 }
 0x12c   :  { %1100 = vmatpush3.bf16.msra.mxu1 %v1179_v48 }
 0x12d   :  { %1101 = vmatprep.subr.bf16.mxu1 %v1217_v43  ;;  %v988_v43 = vld [vmem:[%s1559_s8] ss:$0 sm:$0xff]  ;;  %s1193_s8 = scalar_lea.vmem %s915_s7, 256 }
 0x12e   :  { %p1194_p0 = scmp.ne.s32.totalorder %s915_s7, %s1193_s8  ;;  %p1199_p2 = scmp.lt.s32.totalorder %s1193_s8, %s1193_s8 }
 0x130   :  { %1102 = vmatpush3.bf16.msra.mxu1 %v1180_v49  ;;  %p1200_p3 = por %p1199_p2, %p1198_p1 }
 0x132   :  { %p1201_p4 = pnand %p1200_p3, %p1194_p0 }
 0x1f6   :  { %v702_v53 = vpop.f32.mrb[8].mxu1 }
 0x1f7   :  { %v703_v54 = vadd.f32 %v976_v52, %v702_v53  ;;  %v1093_v55 = vpop.f32.mrb[9].mxu1 }
 0x1f8   :  { %v705_v56 = vpop.f32.mrb[10].mxu1 }
 0x1f9   :  { %v706_v57 = vadd.f32 %v976_v52, %v705_v56  ;;  %v1094_v58 = vpop.f32.mrb[11].mxu1  ;;  %v709_v59 = vmax.f32 %v703_v54, 0.0 }
 0x1fb   :  { %v710_v60 = vmax.f32 %v706_v57, 0.0 }
 0x1fd   :  { %v711_v61 = vpack.c.bf16 %v710_v60, %v709_v59 }
 0x1ff   :  { %1104 = vmatmul.mubr.msk.bf16.vlgmr.msra.gmra.mrb[12].mxu1 %vm664_vm2, %v711_v61 }
 0x2d2   :  { %v788_v1 = vpop.f32.mrb[12].mxu1 }
 0x2d3   :  { %v789_v2 = vadd.f32 %v982_v0, %v788_v1  ;;  %v1105_v3 = vpop.f32.mrb[13].mxu1 }
 0x2d4   :  { %v791_v4 = vpop.f32.mrb[14].mxu1 }
 0x2d5   :  { %v792_v5 = vadd.f32 %v982_v0, %v791_v4  ;;  %v1106_v6 = vpop.f32.mrb[15].mxu1  ;;  %v795_v7 = vmax.f32 %v789_v2, 0.0 }
 0x2d7   :  { %v796_v8 = vmax.f32 %v792_v5, 0.0 }
 0x2d9   :  { %v797_v9 = vpack.c.bf16 %v796_v8, %v795_v7 }
 0x2db   :  { %1116 = vmatmul.mubr.msk.bf16.vlgmr.msra.gmra.mrb[8].mxu0 %vm664_vm2, %v797_v9 }
 0x3ae   :  { %v874_v10 = vpop.f32.mrb[8].mxu0 }
 0x3af   :  { %v875_v11 = vadd.f32 %v988_v43, %v874_v10  ;;  %v1117_v12 = vpop.f32.mrb[9].mxu0 }
 0x3b0   :  { %v877_v13 = vpop.f32.mrb[10].mxu0 }
 0x3b1   :  { %v878_v14 = vadd.f32 %v988_v43, %v877_v13  ;;  %v1118_v15 = vpop.f32.mrb[11].mxu0  ;;  %v882_v16 = vsel %vm881_vm3, %v875_v11, -inf }
 0x3b2   :  { %883 = vmax.xlane.f32.xlu0 %v882_v16 }
 0x3b3   :  { %v886_v17 = vsel %vm885_vm4, %v878_v14, -inf }
 0x3b6   :  { %887 = vmax.xlane.f32.xlu0 %v886_v17 }
 0x43f   :  { %v884_v18 = vpop.xlane.xlu0 %883 }
 0x440   :  { %v889_v19 = vsub.f32 %v875_v11, %v884_v18 }
 0x442   :  { %v891_v20 = vmul.f32 1.442695, %v889_v19 }
 0x443   :  { %v888_v21 = vpop.xlane.xlu0 %887 }
 0x444   :  { %1185 = vpow2.f32 %v891_v20  ;;  %v890_v22 = vsub.f32 %v878_v14, %v888_v21 }
 0x446   :  { %v893_v23 = vmul.f32 1.442695, %v890_v22 }
 0x448   :  { %1187 = vpow2.f32 %v893_v23 }
 0x44e   :  { %v1186_v24 = vpop.eup %1185 }
 0x44f   :  { %v895_v25 = vsel %vm881_vm3, %v1186_v24, 0.0 }
 0x450   :  { %896 = vadd.xlane.f32.xlu1 %v895_v25 }
 0x452   :  { %v1188_v26 = vpop.eup %1187 }
 0x453   :  { %v898_v27 = vsel %vm885_vm4, %v1188_v26, 0.0 }
 0x454   :  { %899 = vadd.xlane.f32.xlu1 %v898_v27 }
 0x4dd   :  { %v897_v28 = vpop.xlane.xlu1 %896 }
 0x4de   :  { %1189 = vlog2.f32 %v897_v28 }
 0x4e1   :  { %v900_v29 = vpop.xlane.xlu1 %899 }
 0x4e2   :  { %1191 = vlog2.f32 %v900_v29 }
 0x4e8   :  { %v1190_v30 = vpop.eup %1189 }
 0x4e9   :  { %v902_v31 = vmul.f32 0.6931472, %v1190_v30 }
 0x4eb   :  { %v905_v32 = vsub.f32 %v889_v19, %v902_v31 }
 0x4ec   :  { %v1192_v33 = vpop.eup %1191 }
 0x4ed   :  { %907 = vst.msk [vmem:[#allocation2] sm:$0xff] %vm881_vm3, %v905_v32  ;;  %v904_v34 = vmul.f32 0.6931472, %v1192_v33 }
 0x4ef   :  { %v906_v35 = vsub.f32 %v890_v22, %v904_v34 }
 0x4f1   :  { %908 = vst.msk [vmem:[#allocation2 + $0x8] sm:$0x3] %vm885_vm4, %v906_v35 }
 0x4f2   :  { %1204 = shalt.err (!%p1201_p4)
}
 0x4f3   :  { %s1205_s14 = scalar_lea.hbm %s1560_s9, 256 }
 0x4f4   :  { %p1206_p5 = scmp.ne.s32.totalorder %s1560_s9, %s1205_s14  ;;  %p1209_p6 = scmp.lt.u32.totalorder %s1205_s14, %s1560_s9 }
 0x4f6   :  { %p1211_p7 = pnand %p1209_p6, %p1206_p5 }
 0x4f8   :  { %1214 = shalt.err (!%p1211_p7)
}
 0x4f9   :  { %s1220_s17 = smov 128   ;;  %s1221_s18 = smov 8  }
 0x4fa   :  { %920 = dma.vmem_to_hbm [thread:$0]  %s915_s7, 256, %s1560_s9, [#allocation3], %s1220_s17, %s1220_s17, %s1221_s18  }
 0x4fb   :  { %1215 = dma.done.wait [#allocation3], 256  }
 0x4fc   :  { %1216 = vsyncadd [#allocation3], 4294967040 }
 0x4fd   :  { %924 = vsyncpa [#allocation3], 1 }

</bundles_post_ra>
